<compile_context>
chip_gen: v5e
topology: v5e:2x2
jax: 0.10.0
libtpu: 0.0.40
codegen_flags: <defaults>
</compile_context>

<pallas_src>
import functools

import jax
import jax.numpy as jnp
from jax.experimental import pallas as pl
from jax.experimental.pallas import tpu as pltpu


_LANE = 128
_SUBLANE_BF16 = 16  # bf16 packs 2 rows/sublane -> prefer 16-row-aligned tiles


def _round_up(x, m):
    return ((x + m - 1) // m) * m


def _gelu_bf16_supported():
    """bf16 VALU/EUP exists on v6e/v7x; v5e has no bf16 elementwise datapath."""
    try:
        kind = jax.devices()[0].device_kind.lower()
    except Exception:
        return True
    if "v5 lite" in kind or "v5e" in kind or "v5litepod" in kind:
        return False
    return True


def _pose_regressor_kernel(x_ref, w1_ref, b1_ref, w2_ref, b2_ref, o_ref, *,
                           approximate_gelu, gelu_in_bf16):
    # x_ref : (TB, D)        f32  VMEM (cast to bf16 in-kernel)
    # w1_ref: (D, CH)        bf16 VMEM (resident, constant index_map)
    # b1_ref: (1, CH)        f32  VMEM
    # w2_ref: (CH, OUT_pad)  bf16 VMEM (resident, zero-padded to 128 lanes)
    # b2_ref: (1, OUT_pad)   f32  VMEM
    # o_ref : (TB, OUT_pad)  f32  VMEM
    #
    # In-kernel cast: cheap VPU op, hidden under the MXU matmul; avoids a
    # wrapper-side HBM round trip on x.
    x = x_ref[...].astype(w1_ref.dtype)
    h = jnp.dot(x, w1_ref[...], preferred_element_type=jnp.float32)
    h = h + b1_ref[...]
    # PyTorch F.gelu default is exact (erf); tanh GELU routes through the EUP
    # slot and differs by <~1e-3.  bf16 GELU halves the vregs touched by the
    # elementwise chain on v6e/v7x; h is cast to bf16 for the second matmul
    # anyway so precision is unchanged in practice.
    gelu_dtype = jnp.bfloat16 if gelu_in_bf16 else jnp.float32
    h = jax.nn.gelu(h.astype(gelu_dtype), approximate=approximate_gelu)
    # NOTE: padded batch rows (partial last block) hold arbitrary adjacent HBM
    # data; results are per-row independent and masked on store, so outputs
    # are correct.  Do not add batch-axis reductions here without masking.
    out = jnp.dot(h.astype(w2_ref.dtype), w2_ref[...],
                  preferred_element_type=jnp.float32)
    out = out + b2_ref[...]
    o_ref[...] = out.astype(o_ref.dtype)


def prepare_pose_regressor_params(w1, b1, w2, b2, *, compute_dtype=jnp.bfloat16):
    """One-time param prep: cast matmul weights to bf16, pad fc_o to 128 lanes.

    Returns (w1_c, b1_2d, w2_p, b2_2d, output_dim).  Run once at init, NOT per
    forward call, so the pad/cast traffic is off the hot path.
    """
    D, CH = w1.shape
    OUT = w2.shape[1]
    OUT_pad = _round_up(max(OUT, _LANE), _LANE)
    w1_c = w1.astype(compute_dtype)
    b1_2d = b1.reshape(1, CH).astype(jnp.float32)
    w2_p = jnp.zeros((CH, OUT_pad), compute_dtype).at[:, :OUT].set(
        w2.astype(compute_dtype))
    b2_2d = jnp.zeros((1, OUT_pad), jnp.float32).at[0, :OUT].set(
        b2.astype(jnp.float32))
    return w1_c, b1_2d, w2_p, b2_2d, OUT


@functools.partial(
    jax.jit,
    static_argnames=("output_dim", "block_b", "approximate_gelu",
                     "gelu_in_bf16"))
def pose_regressor(x, w1, b1_2d, w2_p, b2_2d, *, output_dim, block_b=1024,
                   approximate_gelu=True, gelu_in_bf16=True):
    """x: [B, decoder_dim] f32 -> [B, output_dim] f32.

    Weights must come from prepare_pose_regressor_params().
    """
    B, D = x.shape
    CH = w1.shape[1]
    OUT_pad = w2_p.shape[1]

    # Batch tile: big enough to fill the MXU / amortize per-step overhead, but
    # capped so the grid has >=2 steps (both v7x TensorCores get work) and
    # 16-aligned for bf16 sublane packing.  B itself is always a legal block
    # (full-dim), so tiny batches stay a single block.
    target = max(_SUBLANE_BF16, _round_up(pl.cdiv(B, 2), _SUBLANE_BF16))
    block_b_eff = min(block_b, target, B) if B >= _SUBLANE_BF16 else B
    block_b_eff = max(block_b_eff, 1)
    grid = (pl.cdiv(B, block_b_eff),)

    w_itemsize = jnp.dtype(w1.dtype).itemsize
    cost = pl.CostEstimate(
        flops=2 * B * (D * CH + CH * OUT_pad),
        transcendentals=B * CH,
        bytes_accessed=(B * D * 4                      # x (f32 in HBM)
                        + D * CH * w_itemsize          # w1 (bf16)
                        + CH * OUT_pad * w_itemsize    # w2 (bf16, padded)
                        + (CH + OUT_pad) * 4           # biases (f32)
                        + B * OUT_pad * 4))            # output (f32)

    out_padded = pl.pallas_call(
        functools.partial(_pose_regressor_kernel,
                          approximate_gelu=approximate_gelu,
                          gelu_in_bf16=gelu_in_bf16),
        out_shape=jax.ShapeDtypeStruct((B, OUT_pad), jnp.float32),
        grid_spec=pltpu.PrefetchScalarGridSpec(
            num_scalar_prefetch=0,
            grid=grid,
            in_specs=[
                pl.BlockSpec((block_b_eff, D), lambda i: (i, 0)),   # x tile
                pl.BlockSpec((D, CH), lambda i: (0, 0)),            # w1 resident
                pl.BlockSpec((1, CH), lambda i: (0, 0)),            # b1
                pl.BlockSpec((CH, OUT_pad), lambda i: (0, 0)),      # w2 resident
                pl.BlockSpec((1, OUT_pad), lambda i: (0, 0)),       # b2
            ],
            out_specs=pl.BlockSpec((block_b_eff, OUT_pad), lambda i: (i, 0)),
        ),
        compiler_params=pltpu.CompilerParams(
            # Batch axis is embarrassingly parallel -> megacore sharding.
            dimension_semantics=("parallel",),
        ),
        cost_estimate=cost,
    )(x, w1, b1_2d, w2_p, b2_2d)

    return out_padded[:, :output_dim]


# TODO(synk): the use_prior=True branch (fc_h_prior on [B, 2*decoder_dim]) is not
# exercised here; it is the same kernel with D doubled and different weights.


def _xavier_uniform(key, fan_in, fan_out, dtype=jnp.float32):
    limit = (6.0 / (fan_in + fan_out)) ** 0.5
    return jax.random.uniform(key, (fan_in, fan_out), dtype, -limit, limit)


def _linear_bias(key, fan_in, fan_out, dtype=jnp.float32):
    # PyTorch Linear default bias init: U(-1/sqrt(fan_in), 1/sqrt(fan_in)).
    bound = 1.0 / (fan_in ** 0.5)
    return jax.random.uniform(key, (fan_out,), dtype, -bound, bound)


def reference_forward_f32(x, w1, b1, w2, b2):
    """PyTorch-semantics reference: f32 matmuls, exact erf GELU."""
    h = jax.nn.gelu(x @ w1 + b1, approximate=False)
    return h @ w2 + b2


def reference_forward_matched(x, w1, b1, w2, b2, *, compute_dtype,
                              approximate_gelu, gelu_in_bf16):
    """Reference that mirrors the kernel's dtype/GELU choices."""
    gelu_dtype = jnp.bfloat16 if gelu_in_bf16 else jnp.float32
    h = jnp.dot(x.astype(compute_dtype), w1.astype(compute_dtype),
                preferred_element_type=jnp.float32) + b1
    h = jax.nn.gelu(h.astype(gelu_dtype), approximate=approximate_gelu)
    out = jnp.dot(h.astype(compute_dtype), w2.astype(compute_dtype),
                  preferred_element_type=jnp.float32) + b2
    return out


if __name__ == "__main__":
    # Small shapes consistent with the module: decoder_dim=128, hidden ch=1024
    # (fixed by the module), output_dim=4 (quaternion component), batch=8.
    B, DECODER_DIM, CH, OUTPUT_DIM = 8, 128, 1024, 4

    key = jax.random.PRNGKey(0)
    kx, kw1, kb1, kw2, kb2 = jax.random.split(key, 5)

    x = jax.random.normal(kx, (B, DECODER_DIM), jnp.float32)
    # fc_h: Linear(decoder_dim, 1024) -> stored transposed as (decoder_dim, 1024)
    w1 = _xavier_uniform(kw1, DECODER_DIM, CH)
    b1 = _linear_bias(kb1, DECODER_DIM, CH)
    # fc_o: Linear(1024, output_dim)  -> stored transposed as (1024, output_dim)
    w2 = _xavier_uniform(kw2, CH, OUTPUT_DIM)
    b2 = _linear_bias(kb2, CH, OUTPUT_DIM)

    # One-time parameter prep (bf16 cast + lane padding), off the hot path.
    w1_c, b1_2d, w2_p, b2_2d, out_dim = prepare_pose_regressor_params(
        w1, b1, w2, b2)

    gelu_in_bf16 = _gelu_bf16_supported()

    out = pose_regressor(x, w1_c, b1_2d, w2_p, b2_2d,
                         output_dim=out_dim, gelu_in_bf16=gelu_in_bf16)
    out = jax.block_until_ready(out)
    assert out.shape == (B, OUTPUT_DIM)
    assert out.dtype == jnp.float32

    # Tight check against a reference with identical bf16/GELU choices.
    ref_matched = reference_forward_matched(
        x, w1, b1, w2, b2, compute_dtype=jnp.bfloat16,
        approximate_gelu=True, gelu_in_bf16=gelu_in_bf16)
    assert jnp.allclose(out, ref_matched, atol=2e-2, rtol=2e-2), \
        "mismatch vs. matched (bf16) JAX reference"

    # Loose check against the exact PyTorch-semantics f32/erf reference
    # (bf16 matmuls + tanh GELU introduce small numerical differences).
    ref_f32 = reference_forward_f32(x, w1, b1, w2, b2)
    assert jnp.allclose(out, ref_f32, atol=5e-2, rtol=5e-2), \
        "mismatch vs. f32 erf-GELU reference"

    print("KERNEL_OK")
</pallas_src>

<mosaic_0001>
module attributes {stable_mosaic.version = 11 : i64} {
  func.func @_pose_regressor_kernel(%arg0: i32, %arg1: memref<8x128xf32, #tpu.memory_space<vmem>>, %arg2: memref<128x1024xbf16, #tpu.memory_space<vmem>>, %arg3: memref<1x1024xf32, #tpu.memory_space<vmem>>, %arg4: memref<1024x128xbf16, #tpu.memory_space<vmem>>, %arg5: memref<1x128xf32, #tpu.memory_space<vmem>>, %arg6: memref<8x128xf32, #tpu.memory_space<vmem>>) attributes {dimension_semantics = [#tpu.dimension_semantics<parallel>], iteration_bounds = array<i64: 1>, scalar_prefetch = 0 : i64, scratch_operands = 0 : i64, tpu.core_type = #tpu.core_type<tc>, window_params = [{transform_indices = @transform_0, window_bounds = array<i64: 8, 128>}, {pipeline_mode = #tpu.pipeline_mode<synchronous>, transform_indices = @transform_1, window_bounds = array<i64: 128, 1024>}, {pipeline_mode = #tpu.pipeline_mode<synchronous>, transform_indices = @transform_2, window_bounds = array<i64: 1, 1024>}, {pipeline_mode = #tpu.pipeline_mode<synchronous>, transform_indices = @transform_3, window_bounds = array<i64: 1024, 128>}, {pipeline_mode = #tpu.pipeline_mode<synchronous>, transform_indices = @transform_4, window_bounds = array<i64: 1, 128>}, {transform_indices = @transform_5, window_bounds = array<i64: 8, 128>}]} {
    %c0 = arith.constant 0 : index
    %c0_0 = arith.constant 0 : index
    %0 = vector.load %arg1[%c0, %c0_0] : memref<8x128xf32, #tpu.memory_space<vmem>>, vector<8x128xf32>
    %1 = arith.truncf %0 : vector<8x128xf32> to vector<8x128xbf16>
    %c0_1 = arith.constant 0 : index
    %c0_2 = arith.constant 0 : index
    %2 = vector.load %arg2[%c0_1, %c0_2] : memref<128x1024xbf16, #tpu.memory_space<vmem>>, vector<128x1024xbf16>
    %cst = arith.constant dense<0.000000e+00> : vector<8x1024xf32>
    %3 = tpu.matmul %1, %2, %cst {dimension_numbers = #tpu.dot_dimension_numbers<[1], [0], [0], [1], [0, 0, 1, 1], [], []>} : vector<8x128xbf16>, vector<128x1024xbf16>, vector<8x1024xf32> -> vector<8x1024xf32>
    %c0_3 = arith.constant 0 : index
    %c0_4 = arith.constant 0 : index
    %4 = vector.load %arg3[%c0_3, %c0_4] : memref<1x1024xf32, #tpu.memory_space<vmem>>, vector<1x1024xf32>
    %5 = vector.broadcast %4 : vector<1x1024xf32> to vector<8x1024xf32>
    %6 = arith.addf %3, %5 : vector<8x1024xf32>
    %7 = arith.truncf %6 : vector<8x1024xf32> to vector<8x1024xbf16>
    %8 = arith.mulf %7, %7 : vector<8x1024xbf16>
    %9 = arith.mulf %7, %8 : vector<8x1024xbf16>
    %cst_5 = arith.constant 4.467770e-02 : bf16
    %10 = vector.broadcast %cst_5 : bf16 to vector<8x1024xbf16>
    %11 = arith.mulf %10, %9 : vector<8x1024xbf16>
    %12 = arith.addf %7, %11 : vector<8x1024xbf16>
    %cst_6 = arith.constant 7.968750e-01 : bf16
    %13 = vector.broadcast %cst_6 : bf16 to vector<8x1024xbf16>
    %14 = arith.mulf %13, %12 : vector<8x1024xbf16>
    %15 = math.tanh %14 : vector<8x1024xbf16>
    %cst_7 = arith.constant 1.000000e+00 : bf16
    %16 = vector.broadcast %cst_7 : bf16 to vector<8x1024xbf16>
    %17 = arith.addf %16, %15 : vector<8x1024xbf16>
    %cst_8 = arith.constant 5.000000e-01 : bf16
    %18 = vector.broadcast %cst_8 : bf16 to vector<8x1024xbf16>
    %19 = arith.mulf %18, %17 : vector<8x1024xbf16>
    %20 = arith.mulf %7, %19 : vector<8x1024xbf16>
    %c0_9 = arith.constant 0 : index
    %c0_10 = arith.constant 0 : index
    %21 = vector.load %arg4[%c0_9, %c0_10] : memref<1024x128xbf16, #tpu.memory_space<vmem>>, vector<1024x128xbf16>
    %cst_11 = arith.constant dense<0.000000e+00> : vector<8x128xf32>
    %22 = tpu.matmul %20, %21, %cst_11 {dimension_numbers = #tpu.dot_dimension_numbers<[1], [0], [0], [1], [0, 0, 1, 1], [], []>} : vector<8x1024xbf16>, vector<1024x128xbf16>, vector<8x128xf32> -> vector<8x128xf32>
    %c0_12 = arith.constant 0 : index
    %c0_13 = arith.constant 0 : index
    %23 = vector.load %arg5[%c0_12, %c0_13] : memref<1x128xf32, #tpu.memory_space<vmem>>, vector<1x128xf32>
    %24 = vector.broadcast %23 : vector<1x128xf32> to vector<8x128xf32>
    %25 = arith.addf %22, %24 : vector<8x128xf32>
    %c0_14 = arith.constant 0 : index
    %c0_15 = arith.constant 0 : index
    %26 = vector.load %arg6[%c0_14, %c0_15] : memref<8x128xf32, #tpu.memory_space<vmem>>, vector<8x128xf32>
    tpu.vector_store %arg6[%c0_14, %c0_15], %25 {strides = array<i32>} : memref<8x128xf32, #tpu.memory_space<vmem>>, vector<8x128xf32>,
    return
  }
  func.func @transform_0(%arg0: i32) -> (i32, i32) {
    %c0_i32 = arith.constant 0 : i32
    %c0_i32_0 = arith.constant 0 : i32
    return %arg0, %c0_i32 : i32, i32
  }
  func.func @transform_1(%arg0: i32) -> (i32, i32) {
    %c0_i32 = arith.constant 0 : i32
    %c0_i32_0 = arith.constant 0 : i32
    %c0_i32_1 = arith.constant 0 : i32
    return %c0_i32, %c0_i32_0 : i32, i32
  }
  func.func @transform_2(%arg0: i32) -> (i32, i32) {
    %c0_i32 = arith.constant 0 : i32
    %c0_i32_0 = arith.constant 0 : i32
    %c0_i32_1 = arith.constant 0 : i32
    return %c0_i32, %c0_i32_0 : i32, i32
  }
  func.func @transform_3(%arg0: i32) -> (i32, i32) {
    %c0_i32 = arith.constant 0 : i32
    %c0_i32_0 = arith.constant 0 : i32
    %c0_i32_1 = arith.constant 0 : i32
    return %c0_i32, %c0_i32_0 : i32, i32
  }
  func.func @transform_4(%arg0: i32) -> (i32, i32) {
    %c0_i32 = arith.constant 0 : i32
    %c0_i32_0 = arith.constant 0 : i32
    %c0_i32_1 = arith.constant 0 : i32
    return %c0_i32, %c0_i32_0 : i32, i32
  }
  func.func @transform_5(%arg0: i32) -> (i32, i32) {
    %c0_i32 = arith.constant 0 : i32
    %c0_i32_0 = arith.constant 0 : i32
    return %arg0, %c0_i32 : i32, i32
  }
}

</mosaic_0001>

<bundles_post_ra>
// kernel: pose_regressor.1
= control target key start
LH: loop header
LB: loop body
LE: loop exit
PB: predicated region body
PF: predicated region fallthrough
CT: control target
= control target key end

     0   :  { %10 = vsyncpa [#allocation3], 0  ;;  %s2302_s0 = inlined_call_operand.hbm [shape: f32[8,128], index: 0, kind: input, shape index: {}]   ;;  %s2303_s1 = inlined_call_operand.hbm [shape: bf16[128,1024], index: 1, kind: input, shape index: {}]   ;;  %s2304_s2 = inlined_call_operand.hbm [shape: f32[1,1024], index: 2, kind: input, shape index: {}]   ;;  %s2305_s3 = inlined_call_operand.hbm [shape: bf16[1024,128], index: 3, kind: input, shape index: {}]   ;;  %s2306_s4 = inlined_call_operand.vmem [shape: f32[1,128], index: 4, kind: input, shape index: {}]   ;;  %s2307_s5 = inlined_call_operand.vmem [shape: f32[8,128], index: 5, kind: output, shape index: {}]  }
   0x1   :  { %11 = vsyncpa [#allocation5], 0  ;;  %s28_s20 = sshll.u32 %s2303_s1, 4  ;;  %s29_s20 = int_to_ptr.hbm [resolvable:$true] %s28_s20 }
   0x2   :  { %12 = vsyncpa [#allocation8], 0  ;;  %s2170_s21 = smov [#allocation4]   ;;  %s18_s25 = sshll.u32 %s2302_s0, 4  ;;  %s19_s25 = int_to_ptr.hbm [resolvable:$true] %s18_s25 }
   0x3   :  { %s30_s22 = sshll.u32 %s2170_s21, 4  ;;  %s2171_s26 = smov 512   ;;  %s31_s22 = int_to_ptr.vmem [resolvable:$true] %s30_s22 }
   0x4   :  { %s2172_s27 = smov 32   ;;  %s2173_s28 = smov [#allocation2]  }
   0x5   :  { %36 = dma.hbm_to_vmem [thread:$0]  %s29_s20, 8192, %s31_s22, [#allocation5], %s2171_s26, %s2171_s26, %s2172_s27  }
   0x6   :  { %s20_s29 = sshll.u32 %s2173_s28, 4  ;;  %s42_s7 = sshll.u32 %s2304_s2, 4  ;;  %s21_s29 = int_to_ptr.vmem [resolvable:$true] %s20_s29  ;;  %s43_s7 = int_to_ptr.hbm [resolvable:$true] %s42_s7 }
   0x7   :  { %23 = dma.hbm_to_vmem [thread:$0]  %s19_s25, 128, %s21_s29, [#allocation3]  }
   0x8   :  { %s52_s9 = sshll.u32 %s2305_s3, 4  ;;  %s2174_s10 = smov [#allocation6]   ;;  %s53_s9 = int_to_ptr.hbm [resolvable:$true] %s52_s9 }
   0x9   :  { %s44_s11 = sshll.u32 %s2174_s10, 4  ;;  %s2175_s0 = smov [#allocation7]   ;;  %s45_s11 = int_to_ptr.vmem [resolvable:$true] %s44_s11 }
   0xa   :  { %47 = dma.hbm_to_vmem [thread:$0]  %s43_s7, 128, %s45_s11, [#allocation5]  }
   0xb   :  { %s54_s12 = sshll.u32 %s2175_s0, 4  ;;  %s2176_s13 = smov 64   ;;  %s55_s12 = int_to_ptr.vmem [resolvable:$true] %s54_s12 }
   0xc   :  { %s2177_s14 = smov 4  }
   0xd   :  { %60 = dma.hbm_to_vmem [thread:$0]  %s53_s9, 8192, %s55_s12, [#allocation8], %s2176_s13, %s2176_s13, %s2177_s14  }
   0xe   :  { %2164 = dma.done.wait [#allocation3], 128  }
   0xf   :  { %2165 = vsyncadd [#allocation3], 4294967168 }
  0x10   :  { %2166 = dma.done.wait [#allocation5], 8320  }
  0x11   :  { %2167 = vsyncadd [#allocation5], 4294958976 }
  0x12   :  { %2168 = dma.done.wait [#allocation8], 8192  }
  0x13   :  { %2169 = vsyncadd [#allocation8], 4294959104  ;;  %v1629_v0 = vld [vmem:[#allocation4 + $0x1c0] sm:$0xf]  ;;  %v1971_v2 = vld [vmem:[#allocation4 + $0x1c4] sm:$0xf] }
  0x14   :  { %v1975_v1 = vld [vmem:[#allocation4 + $0x1dc] sm:$0xf0]  ;;  %v1631_v4 = vld [vmem:[#allocation4 + $0x1e0] sm:$0xf0]  ;;  %v1637_v5 = vld [vmem:[#allocation4 + $0x1c8] sm:$0xf] }
  0x15   :  { %v1630_v3 = vor.u32 %v1975_v1, %v1629_v0  ;;  %v1976_v6 = vld [vmem:[#allocation4 + $0x1e4] sm:$0xf0]  ;;  %v1634_v7 = vor.u32 %v1971_v2, %v1631_v4  ;;  %v1972_v9 = vld [vmem:[#allocation4 + $0x1cc] sm:$0xf]  ;;  %v1597_v11 = vld [vmem:[#allocation4 + $0x180] sm:$0xf] }
  0x16   :  { %v1638_v8 = vor.u32 %v1976_v6, %v1637_v5  ;;  %v1639_v10 = vld [vmem:[#allocation4 + $0x1e8] sm:$0xf0]  ;;  %v1967_v13 = vld [vmem:[#allocation4 + $0x19c] sm:$0xf0]  ;;  %v1963_v14 = vld [vmem:[#allocation4 + $0x184] sm:$0xf] }
  0x17   :  { %483 = vmatpush.bf16.msra.mxu0 %v1630_v3  ;;  %v1642_v12 = vor.u32 %v1972_v9, %v1639_v10  ;;  %v1599_v15 = vld [vmem:[#allocation4 + $0x1a0] sm:$0xf0]  ;;  %496 = vmatpush.bf16.msra.mxu1 %v1634_v7  ;;  %v1598_v16 = vor.u32 %v1967_v13, %v1597_v11  ;;  %v1605_v18 = vld [vmem:[#allocation4 + $0x188] sm:$0xf]  ;;  %v1964_v20 = vld [vmem:[#allocation4 + $0x18c] sm:$0xf] }
  0x18   :  { %509 = vmatpush.bf16.msra.mxu2 %v1638_v8  ;;  %v1602_v17 = vor.u32 %v1963_v14, %v1599_v15  ;;  %v1968_v19 = vld [vmem:[#allocation4 + $0x1a4] sm:$0xf0]  ;;  %v1607_v22 = vld [vmem:[#allocation4 + $0x1a8] sm:$0xf0]  ;;  %v1565_v23 = vld [vmem:[#allocation4 + $0x140] sm:$0xf] }
  0x19   :  { %522 = vmatpush.bf16.msra.mxu3 %v1642_v12  ;;  %v1606_v21 = vor.u32 %v1968_v19, %v1605_v18  ;;  %v1959_v24 = vld [vmem:[#allocation4 + $0x15c] sm:$0xf0]  ;;  %v1610_v25 = vor.u32 %v1964_v20, %v1607_v22  ;;  %v1955_v26 = vld [vmem:[#allocation4 + $0x144] sm:$0xf]  ;;  %v1573_v28 = vld [vmem:[#allocation4 + $0x148] sm:$0xf] }
  0x1a   :  { %v1567_v27 = vld [vmem:[#allocation4 + $0x160] sm:$0xf0]  ;;  %v1566_v29 = vor.u32 %v1959_v24, %v1565_v23  ;;  %v1960_v30 = vld [vmem:[#allocation4 + $0x164] sm:$0xf0]  ;;  %v1956_v31 = vld [vmem:[#allocation4 + $0x14c] sm:$0xf] }
  0x1b   :  { %484 = vmatpush.bf16.msra.mxu0 %v1598_v16  ;;  %v1575_v32 = vld [vmem:[#allocation4 + $0x168] sm:$0xf0]  ;;  %497 = vmatpush.bf16.msra.mxu1 %v1602_v17  ;;  %v1570_v33 = vor.u32 %v1955_v26, %v1567_v27  ;;  %v1574_v34 = vor.u32 %v1960_v30, %v1573_v28  ;;  %v1533_v35 = vld [vmem:[#allocation4 + $0x100] sm:$0xf]  ;;  %v1947_v37 = vld [vmem:[#allocation4 + $0x104] sm:$0xf] }
  0x1c   :  { %510 = vmatpush.bf16.msra.mxu2 %v1606_v21  ;;  %v1951_v36 = vld [vmem:[#allocation4 + $0x11c] sm:$0xf0]  ;;  %v1578_v38 = vor.u32 %v1956_v31, %v1575_v32  ;;  %v1535_v39 = vld [vmem:[#allocation4 + $0x120] sm:$0xf0]  ;;  %v1541_v40 = vld [vmem:[#allocation4 + $0x108] sm:$0xf] }
  0x1d   :  { %523 = vmatpush.bf16.msra.mxu3 %v1610_v25  ;;  %v1952_v41 = vld [vmem:[#allocation4 + $0x124] sm:$0xf0]  ;;  %v1948_v42 = vld [vmem:[#allocation4 + $0x10c] sm:$0xf]  ;;  %v1534_v44 = vor.u32 %v1951_v36, %v1533_v35  ;;  %v1538_v45 = vor.u32 %v1947_v37, %v1535_v39  ;;  %v1501_v47 = vld [vmem:[#allocation4 + $0xc0] sm:$0xf] }
  0x1e   :  { %v1543_v43 = vld [vmem:[#allocation4 + $0x128] sm:$0xf0]  ;;  %v1542_v46 = vor.u32 %v1952_v41, %v1541_v40  ;;  %v1943_v48 = vld [vmem:[#allocation4 + $0xdc] sm:$0xf0]  ;;  %v1939_v49 = vld [vmem:[#allocation4 + $0xc4] sm:$0xf] }
  0x1f   :  { %485 = vmatpush.bf16.msra.mxu0 %v1566_v29  ;;  %498 = vmatpush.bf16.msra.mxu1 %v1570_v33  ;;  %v1546_v50 = vor.u32 %v1948_v42, %v1543_v43  ;;  %v1503_v51 = vld [vmem:[#allocation4 + $0xe0] sm:$0xf0]  ;;  %v1509_v52 = vld [vmem:[#allocation4 + $0xc8] sm:$0xf]  ;;  %v1940_v54 = vld [vmem:[#allocation4 + $0xcc] sm:$0xf]  ;;  %v1502_v56 = vor.u32 %v1943_v48, %v1501_v47 }
  0x20   :  { %511 = vmatpush.bf16.msra.mxu2 %v1574_v34  ;;  %v1944_v53 = vld [vmem:[#allocation4 + $0xe4] sm:$0xf0]  ;;  %v1511_v55 = vld [vmem:[#allocation4 + $0xe8] sm:$0xf0]  ;;  %v1506_v57 = vor.u32 %v1939_v49, %v1503_v51  ;;  %v1469_v59 = vld [vmem:[#allocation4 + $0x80] sm:$0xf] }
  0x21   :  { %524 = vmatpush.bf16.msra.mxu3 %v1578_v38  ;;  %v1510_v58 = vor.u32 %v1944_v53, %v1509_v52  ;;  %v1935_v60 = vld [vmem:[#allocation4 + $0x9c] sm:$0xf0]  ;;  %v1931_v61 = vld [vmem:[#allocation4 + $0x84] sm:$0xf]  ;;  %v1514_v62 = vor.u32 %v1940_v54, %v1511_v55  ;;  %v1477_v0 = vld [vmem:[#allocation4 + $0x88] sm:$0xf] }
  0x22   :  { %v1471_v63 = vld [vmem:[#allocation4 + $0xa0] sm:$0xf0]  ;;  %v1936_v1 = vld [vmem:[#allocation4 + $0xa4] sm:$0xf0]  ;;  %v1932_v2 = vld [vmem:[#allocation4 + $0x8c] sm:$0xf]  ;;  %v1470_v4 = vor.u32 %v1935_v60, %v1469_v59 }
  0x23   :  { %486 = vmatpush.bf16.msra.mxu0 %v1534_v44  ;;  %499 = vmatpush.bf16.msra.mxu1 %v1538_v45  ;;  %v1479_v3 = vld [vmem:[#allocation4 + $0xa8] sm:$0xf0]  ;;  %v1474_v5 = vor.u32 %v1931_v61, %v1471_v63  ;;  %v1478_v6 = vor.u32 %v1936_v1, %v1477_v0  ;;  %v1437_v7 = vld [vmem:[#allocation4 + $0x40] sm:$0xf]  ;;  %v1923_v9 = vld [vmem:[#allocation4 + $0x44] sm:$0xf] }
  0x24   :  { %512 = vmatpush.bf16.msra.mxu2 %v1542_v46  ;;  %v1927_v8 = vld [vmem:[#allocation4 + $0x5c] sm:$0xf0]  ;;  %v1482_v10 = vor.u32 %v1932_v2, %v1479_v3  ;;  %v1439_v11 = vld [vmem:[#allocation4 + $0x60] sm:$0xf0]  ;;  %v1445_v12 = vld [vmem:[#allocation4 + $0x48] sm:$0xf] }
  0x25   :  { %525 = vmatpush.bf16.msra.mxu3 %v1546_v50  ;;  %v1928_v13 = vld [vmem:[#allocation4 + $0x64] sm:$0xf0]  ;;  %v1924_v14 = vld [vmem:[#allocation4 + $0x4c] sm:$0xf]  ;;  %v1438_v16 = vor.u32 %v1927_v8, %v1437_v7  ;;  %v1405_v17 = vld [vmem:[#allocation4] sm:$0xf]  ;;  %v1442_v19 = vor.u32 %v1923_v9, %v1439_v11 }
  0x26   :  { %v1447_v15 = vld [vmem:[#allocation4 + $0x68] sm:$0xf0]  ;;  %v1919_v18 = vld [vmem:[#allocation4 + $0x1c] sm:$0xf0]  ;;  %v1446_v20 = vor.u32 %v1928_v13, %v1445_v12  ;;  %v1915_v21 = vld [vmem:[#allocation4 + $0x4] sm:$0xf] }
  0x27   :  { %487 = vmatpush.bf16.msra.mxu0 %v1502_v56  ;;  %500 = vmatpush.bf16.msra.mxu1 %v1506_v57  ;;  %v1407_v22 = vld [vmem:[#allocation4 + $0x20] sm:$0xf0]  ;;  %v1413_v23 = vld [vmem:[#allocation4 + $0x8] sm:$0xf]  ;;  %v1450_v24 = vor.u32 %v1924_v14, %v1447_v15  ;;  %v1916_v26 = vld [vmem:[#allocation4 + $0xc] sm:$0xf]  ;;  %v1406_v31 = vor.u32 %v1919_v18, %v1405_v17 }
  0x28   :  { %513 = vmatpush.bf16.msra.mxu2 %v1510_v58  ;;  %v1920_v25 = vld [vmem:[#allocation4 + $0x24] sm:$0xf0]  ;;  %v1415_v27 = vld [vmem:[#allocation4 + $0x28] sm:$0xf0]  ;;  %v1645_v28 = vld [vmem:[#allocation4 + $0x1d0] sm:$0xf]  ;;  %v1410_v35 = vor.u32 %v1915_v21, %v1407_v22 }
  0x29   :  { %526 = vmatpush.bf16.msra.mxu3 %v1514_v62  ;;  %v1977_v29 = vld [vmem:[#allocation4 + $0x1ec] sm:$0xf0]  ;;  %v1973_v30 = vld [vmem:[#allocation4 + $0x1d4] sm:$0xf]  ;;  %v1653_v33 = vld [vmem:[#allocation4 + $0x1d8] sm:$0xf]  ;;  %v1414_v36 = vor.u32 %v1920_v25, %v1413_v23  ;;  %v1418_v40 = vor.u32 %v1916_v26, %v1415_v27 }
  0x2a   :  { %v1647_v32 = vld [vmem:[#allocation4 + $0x1f0] sm:$0xf0]  ;;  %v1978_v34 = vld [vmem:[#allocation4 + $0x1f4] sm:$0xf0]  ;;  %v1974_v37 = vld [vmem:[#allocation4 + $0x1dc] sm:$0xf]  ;;  %v1646_v41 = vor.u32 %v1977_v29, %v1645_v28 }
  0x2b   :  { %488 = vmatpush.bf16.msra.mxu0 %v1470_v4  ;;  %501 = vmatpush.bf16.msra.mxu1 %v1474_v5  ;;  %v1655_v38 = vld [vmem:[#allocation4 + $0x1f8] sm:$0xf0]  ;;  %v1650_v42 = vor.u32 %v1973_v30, %v1647_v32  ;;  %v1654_v43 = vor.u32 %v1978_v34, %v1653_v33  ;;  %v1613_v44 = vld [vmem:[#allocation4 + $0x190] sm:$0xf]  ;;  %v1965_v46 = vld [vmem:[#allocation4 + $0x194] sm:$0xf] }
  0x2c   :  { %514 = vmatpush.bf16.msra.mxu2 %v1478_v6  ;;  %v79_v39 = vld [vmem:[#allocation2] sm:$0xff]  ;;  %v1969_v45 = vld [vmem:[#allocation4 + $0x1ac] sm:$0xf0]  ;;  %v1658_v47 = vor.u32 %v1974_v37, %v1655_v38  ;;  %v1615_v49 = vld [vmem:[#allocation4 + $0x1b0] sm:$0xf0] }
  0x2d   :  { %527 = vmatpush.bf16.msra.mxu3 %v1482_v10  ;;  %v2220_v48 = vpack.c.bf16 %v79_v39, %v79_v39  ;;  %v1621_v50 = vld [vmem:[#allocation4 + $0x198] sm:$0xf]  ;;  %v1966_v52 = vld [vmem:[#allocation4 + $0x19c] sm:$0xf]  ;;  %v1614_v54 = vor.u32 %v1969_v45, %v1613_v44  ;;  %v1618_v55 = vor.u32 %v1965_v46, %v1615_v49  ;;  %v1581_v57 = vld [vmem:[#allocation4 + $0x150] sm:$0xf] }
  0x2e   :  { %v1970_v51 = vld [vmem:[#allocation4 + $0x1b4] sm:$0xf0]  ;;  %v1623_v53 = vld [vmem:[#allocation4 + $0x1b8] sm:$0xf0]  ;;  %v1961_v58 = vld [vmem:[#allocation4 + $0x16c] sm:$0xf0] }
  0x2f   :  { %489 = vmatpush.bf16.msra.mxu0 %v1438_v16  ;;  %502 = vmatpush.bf16.msra.mxu1 %v1442_v19  ;;  %v1622_v56 = vor.u32 %v1970_v51, %v1621_v50  ;;  %v1957_v59 = vld [vmem:[#allocation4 + $0x154] sm:$0xf]  ;;  %v1626_v60 = vor.u32 %v1966_v52, %v1623_v53  ;;  %v1589_v62 = vld [vmem:[#allocation4 + $0x158] sm:$0xf]  ;;  %v1958_v0 = vld [vmem:[#allocation4 + $0x15c] sm:$0xf]  ;;  %v1582_v2 = vor.u32 %v1961_v58, %v1581_v57 }
  0x30   :  { %515 = vmatpush.bf16.msra.mxu2 %v1446_v20  ;;  %v1583_v61 = vld [vmem:[#allocation4 + $0x170] sm:$0xf0]  ;;  %v1962_v63 = vld [vmem:[#allocation4 + $0x174] sm:$0xf0]  ;;  %v1591_v1 = vld [vmem:[#allocation4 + $0x178] sm:$0xf0] }
  0x31   :  { %528 = vmatpush.bf16.msra.mxu3 %v1450_v24  ;;  %v1586_v3 = vor.u32 %v1957_v59, %v1583_v61  ;;  %v1590_v4 = vor.u32 %v1962_v63, %v1589_v62  ;;  %v1549_v5 = vld [vmem:[#allocation4 + $0x110] sm:$0xf]  ;;  %v1949_v7 = vld [vmem:[#allocation4 + $0x114] sm:$0xf]  ;;  %v1594_v8 = vor.u32 %v1958_v0, %v1591_v1  ;;  %v1557_v10 = vld [vmem:[#allocation4 + $0x118] sm:$0xf] }
  0x32   :  { %v1953_v6 = vld [vmem:[#allocation4 + $0x12c] sm:$0xf0]  ;;  %v1551_v9 = vld [vmem:[#allocation4 + $0x130] sm:$0xf0]  ;;  %v1954_v11 = vld [vmem:[#allocation4 + $0x134] sm:$0xf0] }
  0x33   :  { %490 = vmatpush.bf16.msra.mxu0 %v1406_v31  ;;  %503 = vmatpush.bf16.msra.mxu1 %v1410_v35  ;;  %v1950_v12 = vld [vmem:[#allocation4 + $0x11c] sm:$0xf]  ;;  %v1550_v14 = vor.u32 %v1953_v6, %v1549_v5  ;;  %v1517_v15 = vld [vmem:[#allocation4 + $0xd0] sm:$0xf]  ;;  %v1554_v16 = vor.u32 %v1949_v7, %v1551_v9  ;;  %v1558_v17 = vor.u32 %v1954_v11, %v1557_v10  ;;  %v1941_v19 = vld [vmem:[#allocation4 + $0xd4] sm:$0xf] }
  0x34   :  { %516 = vmatpush.bf16.msra.mxu2 %v1414_v36  ;;  %v1559_v13 = vld [vmem:[#allocation4 + $0x138] sm:$0xf0]  ;;  %v1945_v18 = vld [vmem:[#allocation4 + $0xec] sm:$0xf0]  ;;  %v1519_v20 = vld [vmem:[#allocation4 + $0xf0] sm:$0xf0] }
  0x35   :  { %529 = vmatpush.bf16.msra.mxu3 %v1418_v40  ;;  %v1562_v21 = vor.u32 %v1950_v12, %v1559_v13  ;;  %v1525_v22 = vld [vmem:[#allocation4 + $0xd8] sm:$0xf]  ;;  %v1942_v24 = vld [vmem:[#allocation4 + $0xdc] sm:$0xf]  ;;  %v1518_v26 = vor.u32 %v1945_v18, %v1517_v15  ;;  %v1522_v27 = vor.u32 %v1941_v19, %v1519_v20  ;;  %v1485_v29 = vld [vmem:[#allocation4 + $0x90] sm:$0xf] }
  0x36   :  { %491 = vmatmul.bf16.vlgmr.msra.gmra.mxu0 %v2220_v48  ;;  %504 = vmatmul.bf16.vlgmr.msra.gmra.mxu1 %v2220_v48  ;;  %v1946_v23 = vld [vmem:[#allocation4 + $0xf4] sm:$0xf0]  ;;  %v1527_v25 = vld [vmem:[#allocation4 + $0xf8] sm:$0xf0]  ;;  %v1937_v30 = vld [vmem:[#allocation4 + $0xac] sm:$0xf0] }
  0x37   :  { %535 = vmatpush.bf16.msrb.mxu0 %v1646_v41  ;;  %548 = vmatpush.bf16.msrb.mxu1 %v1650_v42  ;;  %v1526_v28 = vor.u32 %v1946_v23, %v1525_v22  ;;  %v1933_v31 = vld [vmem:[#allocation4 + $0x94] sm:$0xf]  ;;  %v1530_v32 = vor.u32 %v1942_v24, %v1527_v25  ;;  %v1493_v34 = vld [vmem:[#allocation4 + $0x98] sm:$0xf]  ;;  %v1934_v36 = vld [vmem:[#allocation4 + $0x9c] sm:$0xf]  ;;  %v1486_v38 = vor.u32 %v1937_v30, %v1485_v29 }
  0x38   :  { %561 = vmatpush.bf16.msrb.mxu2 %v1654_v43  ;;  %530 = vmatmul.bf16.vlgmr.msra.gmra.mxu3 %v2220_v48  ;;  %v1487_v33 = vld [vmem:[#allocation4 + $0xb0] sm:$0xf0]  ;;  %v1938_v35 = vld [vmem:[#allocation4 + $0xb4] sm:$0xf0]  ;;  %v1495_v37 = vld [vmem:[#allocation4 + $0xb8] sm:$0xf0] }
  0x39   :  { %574 = vmatpush.bf16.msrb.mxu3 %v1658_v47  ;;  %517 = vmatmul.bf16.vlgmr.msra.gmra.mxu2 %v2220_v48  ;;  %v1490_v39 = vor.u32 %v1933_v31, %v1487_v33  ;;  %v1494_v40 = vor.u32 %v1938_v35, %v1493_v34  ;;  %v1453_v41 = vld [vmem:[#allocation4 + $0x50] sm:$0xf]  ;;  %v1925_v43 = vld [vmem:[#allocation4 + $0x54] sm:$0xf]  ;;  %v1498_v44 = vor.u32 %v1934_v36, %v1495_v37  ;;  %v1461_v46 = vld [vmem:[#allocation4 + $0x58] sm:$0xf] }
  0x3a   :  { %v1929_v42 = vld [vmem:[#allocation4 + $0x6c] sm:$0xf0]  ;;  %v1455_v45 = vld [vmem:[#allocation4 + $0x70] sm:$0xf0]  ;;  %v1930_v47 = vld [vmem:[#allocation4 + $0x74] sm:$0xf0] }
  0x3b   :  { %536 = vmatpush.bf16.msrb.mxu0 %v1614_v54  ;;  %549 = vmatpush.bf16.msrb.mxu1 %v1618_v55  ;;  %v1926_v49 = vld [vmem:[#allocation4 + $0x5c] sm:$0xf]  ;;  %v1454_v51 = vor.u32 %v1929_v42, %v1453_v41  ;;  %v1458_v52 = vor.u32 %v1925_v43, %v1455_v45  ;;  %v1462_v53 = vor.u32 %v1930_v47, %v1461_v46  ;;  %v1421_v54 = vld [vmem:[#allocation4 + $0x10] sm:$0xf]  ;;  %v1423_v58 = vld [vmem:[#allocation4 + $0x30] sm:$0xf0] }
  0x3c   :  { %562 = vmatpush.bf16.msrb.mxu2 %v1622_v56  ;;  %v1463_v50 = vld [vmem:[#allocation4 + $0x78] sm:$0xf0]  ;;  %v1921_v55 = vld [vmem:[#allocation4 + $0x2c] sm:$0xf0]  ;;  %v1917_v56 = vld [vmem:[#allocation4 + $0x14] sm:$0xf] }
  0x3d   :  { %575 = vmatpush.bf16.msrb.mxu3 %v1626_v60  ;;  %v1466_v57 = vor.u32 %v1926_v49, %v1463_v50  ;;  %v1429_v59 = vld [vmem:[#allocation4 + $0x18] sm:$0xf]  ;;  %v1918_v61 = vld [vmem:[#allocation4 + $0x1c] sm:$0xf]  ;;  %v1422_v63 = vor.u32 %v1921_v55, %v1421_v54  ;;  %v1426_v0 = vor.u32 %v1917_v56, %v1423_v58  ;;  %v1986_v10 = vld [vmem:[#allocation7 + $0x38] sm:$0xff] }
  0x3e   :  { %v1922_v60 = vld [vmem:[#allocation4 + $0x34] sm:$0xf0]  ;;  %v1431_v62 = vld [vmem:[#allocation4 + $0x38] sm:$0xf0]  ;;  %v1994_v11 = vld [vmem:[#allocation7 + $0x78] sm:$0xff] }
  0x3f   :  { %537 = vmatpush.bf16.msrb.mxu0 %v1582_v2  ;;  %550 = vmatpush.bf16.msrb.mxu1 %v1586_v3  ;;  %v1430_v1 = vor.u32 %v1922_v60, %v1429_v59  ;;  %v1434_v2 = vor.u32 %v1918_v61, %v1431_v62  ;;  %v2230_v3 = vld [vmem:[#allocation6] sm:$0xff]  ;;  %v1984_v29 = vld [vmem:[#allocation7 + $0x28] sm:$0xff]  ;;  %v2001_v34 = vld [vmem:[#allocation7 + $0xb0] sm:$0xff] }
  0x40   :  { %563 = vmatpush.bf16.msrb.mxu2 %v1590_v4  ;;  %v147_v4 = vperm.slane %v2230_v3, 0  ;;  %v148_v5 = vperm.slane %v2230_v3, 1  ;;  %v149_v13 = vperm.slane %v2230_v3, 2  ;;  %v2002_v24 = vld [vmem:[#allocation7 + $0xb8] sm:$0xff]  ;;  %v1992_v30 = vld [vmem:[#allocation7 + $0x68] sm:$0xff]  ;;  %v2009_v35 = vld [vmem:[#allocation7 + $0xf0] sm:$0xff] }
  0x41   :  { %576 = vmatpush.bf16.msrb.mxu3 %v1594_v8  ;;  %v2010_v25 = vld [vmem:[#allocation7 + $0xf8] sm:$0xff]  ;;  %v1991_v41 = vld [vmem:[#allocation7 + $0x60] sm:$0xff]  ;;  %v2000_v47 = vld [vmem:[#allocation7 + $0xa8] sm:$0xff] }
  0x42   :  { %v2008_v49 = vld [vmem:[#allocation7 + $0xe8] sm:$0xff]  ;;  %v1990_v54 = vld [vmem:[#allocation7 + $0x58] sm:$0xff]  ;;  %v1999_v59 = vld [vmem:[#allocation7 + $0xa0] sm:$0xff] }
  0x43   :  { %538 = vmatpush.bf16.msrb.mxu0 %v1550_v14  ;;  %551 = vmatpush.bf16.msrb.mxu1 %v1554_v16  ;;  %v150_v14 = vperm.slane %v2230_v3, 3  ;;  %v1985_v16 = vld [vmem:[#allocation7 + $0x30] sm:$0xff]  ;;  %v2007_v60 = vld [vmem:[#allocation7 + $0xe0] sm:$0xff] }
  0x44   :  { %564 = vmatpush.bf16.msrb.mxu2 %v1558_v17  ;;  %v1993_v17 = vld [vmem:[#allocation7 + $0x70] sm:$0xff] }
  0x45   :  { %577 = vmatpush.bf16.msrb.mxu3 %v1562_v21 }
  0x47   :  { %539 = vmatpush.bf16.msrb.mxu0 %v1518_v26  ;;  %552 = vmatpush.bf16.msrb.mxu1 %v1522_v27 }
  0x48   :  { %565 = vmatpush.bf16.msrb.mxu2 %v1526_v28 }
  0x49   :  { %578 = vmatpush.bf16.msrb.mxu3 %v1530_v32 }
  0x4b   :  { %540 = vmatpush.bf16.msrb.mxu0 %v1486_v38  ;;  %553 = vmatpush.bf16.msrb.mxu1 %v1490_v39 }
  0x4c   :  { %566 = vmatpush.bf16.msrb.mxu2 %v1494_v40  ;;  %v1983_v40 = vld [vmem:[#allocation7 + $0x20] sm:$0xff] }
  0x4d   :  { %579 = vmatpush.bf16.msrb.mxu3 %v1498_v44 }
  0x4f   :  { %541 = vmatpush.bf16.msrb.mxu0 %v1454_v51  ;;  %554 = vmatpush.bf16.msrb.mxu1 %v1458_v52 }
  0x50   :  { %567 = vmatpush.bf16.msrb.mxu2 %v1462_v53  ;;  %v1982_v53 = vld [vmem:[#allocation7 + $0x18] sm:$0xff] }
  0x51   :  { %580 = vmatpush.bf16.msrb.mxu3 %v1466_v57 }
  0x53   :  { %542 = vmatpush.bf16.msrb.mxu0 %v1422_v63  ;;  %555 = vmatpush.bf16.msrb.mxu1 %v1426_v0  ;;  %v1981_v0 = vld [vmem:[#allocation7 + $0x10] sm:$0xff] }
  0x54   :  { %568 = vmatpush.bf16.msrb.mxu2 %v1430_v1  ;;  %v1989_v1 = vld [vmem:[#allocation7 + $0x50] sm:$0xff] }
  0x55   :  { %581 = vmatpush.bf16.msrb.mxu3 %v1434_v2 }
  0x56   :  { %543 = vmatmul.bf16.vlgmr.msrb.gmra.mxu0 %v2220_v48  ;;  %556 = vmatmul.bf16.vlgmr.msrb.gmra.mxu1 %v2220_v48 }
  0x57   :  { %569 = vmatmul.bf16.vlgmr.msrb.gmra.mxu2 %v2220_v48  ;;  %1291 = vmatpush.bf16.msra.mxu0 %v1986_v10 }
  0x58   :  { %582 = vmatmul.bf16.vlgmr.msrb.gmra.mxu3 %v2220_v48  ;;  %1304 = vmatpush.bf16.msra.mxu1 %v1994_v11 }
  0x59   :  { %1317 = vmatpush.bf16.msra.mxu2 %v2002_v24  ;;  %1330 = vmatpush.bf16.msra.mxu3 %v2010_v25 }
  0x5b   :  { %1292 = vmatpush.bf16.msra.mxu0 %v1985_v16 }
  0x5c   :  { %1305 = vmatpush.bf16.msra.mxu1 %v1993_v17 }
  0x5d   :  { %1318 = vmatpush.bf16.msra.mxu2 %v2001_v34  ;;  %1331 = vmatpush.bf16.msra.mxu3 %v2009_v35  ;;  %v2026_v34 = vld [vmem:[#allocation7 + $0x178] sm:$0xff] }
  0x5f   :  { %1293 = vmatpush.bf16.msra.mxu0 %v1984_v29  ;;  %v1987_v29 = vld [vmem:[#allocation7 + $0x40] sm:$0xff] }
  0x60   :  { %1306 = vmatpush.bf16.msra.mxu1 %v1992_v30 }
  0x61   :  { %1319 = vmatpush.bf16.msra.mxu2 %v2000_v47  ;;  %1332 = vmatpush.bf16.msra.mxu3 %v2008_v49 }
  0x63   :  { %1294 = vmatpush.bf16.msra.mxu0 %v1983_v40  ;;  %v2004_v40 = vld [vmem:[#allocation7 + $0xc8] sm:$0xff] }
  0x64   :  { %1307 = vmatpush.bf16.msra.mxu1 %v1991_v41 }
  0x65   :  { %1320 = vmatpush.bf16.msra.mxu2 %v1999_v59  ;;  %1333 = vmatpush.bf16.msra.mxu3 %v2007_v60 }
  0x67   :  { %1295 = vmatpush.bf16.msra.mxu0 %v1982_v53 }
  0x68   :  { %1308 = vmatpush.bf16.msra.mxu1 %v1990_v54 }
  0x6b   :  { %1296 = vmatpush.bf16.msra.mxu0 %v1981_v0  ;;  %v2042_v0 = vld [vmem:[#allocation7 + $0x1f8] sm:$0xff] }
  0x6c   :  { %1309 = vmatpush.bf16.msra.mxu1 %v1989_v1 }
  0xb3   :  { %v492_v6 = vpop.f32.mrf.mxu0  ;;  %v505_v8 = vpop.f32.mrf.mxu1 }
  0xb4   :  { %v493_v7 = vadd.f32 %v492_v6, %v147_v4  ;;  %v506_v9 = vadd.f32 %v505_v8, %v148_v5  ;;  %v1998_v6 = vld [vmem:[#allocation7 + $0x98] sm:$0xff] }
  0xb5   :  { %1321 = vmatpush.bf16.msra.mxu2 %v1998_v6 }
  0xb6   :  { %v587_v12 = vpack.c.bf16 %v506_v9, %v493_v7  ;;  %v2006_v7 = vld [vmem:[#allocation7 + $0xd8] sm:$0xff] }
  0xb7   :  { %1334 = vmatpush.bf16.msra.mxu3 %v2006_v7 }
  0xb8   :  { %v2236_v48 = vunpack.c.l.bf16 %v587_v12  ;;  %v2238_v15 = vunpack.c.h.bf16 %v587_v12  ;;  %v151_v12 = vperm.slane %v2230_v3, 4 }
  0xba   :  { %v599_v19 = vmul.f32 %v2236_v48, %v2236_v48  ;;  %v600_v20 = vmul.f32 %v2238_v15, %v2238_v15 }
  0xbb   :  { %v531_v22 = vpop.f32.mrf.mxu3  ;;  %v494_v23 = vpop.f32.mrf.mxu0 }
  0xbc   :  { %v518_v18 = vpop.f32.mrf.mxu2  ;;  %v532_v26 = vadd.f32 %v531_v22, %v150_v14  ;;  %v507_v27 = vpop.f32.mrf.mxu1  ;;  %v607_v28 = vpack.c.bf16 %v600_v20, %v599_v19  ;;  %v1988_v14 = vld [vmem:[#allocation7 + $0x48] sm:$0xff]  ;;  %v1997_v20 = vld [vmem:[#allocation7 + $0x90] sm:$0xff] }
  0xbd   :  { %v519_v21 = vadd.f32 %v518_v18, %v149_v13  ;;  %v1980_v13 = vld [vmem:[#allocation7 + $0x8] sm:$0xff]  ;;  %v152_v18 = vperm.slane %v2230_v3, 5  ;;  %1310 = vmatpush.bf16.msra.mxu1 %v1988_v14  ;;  %1322 = vmatpush.bf16.msra.mxu2 %v1997_v20  ;;  %v2033_v14 = vld [vmem:[#allocation7 + $0x1b0] sm:$0xff] }
  0xbe   :  { %v611_v32 = vunpack.c.l.bf16 %v607_v28  ;;  %v612_v33 = vunpack.c.h.bf16 %v607_v28  ;;  %1297 = vmatpush.bf16.msra.mxu0 %v1980_v13  ;;  %v1979_v28 = vld [vmem:[#allocation7] sm:$0xff] }
  0xbf   :  { %v588_v31 = vpack.c.bf16 %v532_v26, %v519_v21  ;;  %v2005_v21 = vld [vmem:[#allocation7 + $0xd0] sm:$0xff] }
  0xc0   :  { %v619_v38 = vmul.f32 %v611_v32, %v2236_v48  ;;  %v620_v39 = vmul.f32 %v612_v33, %v2238_v15  ;;  %1335 = vmatpush.bf16.msra.mxu3 %v2005_v21  ;;  %v2018_v33 = vld [vmem:[#allocation7 + $0x138] sm:$0xff] }
  0xc1   :  { %v2244_v36 = vunpack.c.l.bf16 %v588_v31  ;;  %v2246_v37 = vunpack.c.h.bf16 %v588_v31  ;;  %1311 = vmatpush.bf16.msra.mxu1 %v1987_v29 }
  0xc2   :  { %v627_v45 = vpack.c.bf16 %v620_v39, %v619_v38  ;;  %1298 = vmatpush.bf16.msra.mxu0 %v1979_v28  ;;  %v1996_v39 = vld [vmem:[#allocation7 + $0x88] sm:$0xff] }
  0xc3   :  { %v601_v42 = vmul.f32 %v2244_v36, %v2244_v36  ;;  %v602_v43 = vmul.f32 %v2246_v37, %v2246_v37  ;;  %v533_v46 = vpop.f32.mrf.mxu3  ;;  %1323 = vmatpush.bf16.msra.mxu2 %v1996_v39 }
  0xc4   :  { %v520_v44 = vpop.f32.mrf.mxu2  ;;  %v631_v51 = vunpack.c.l.bf16 %v627_v45  ;;  %v632_v52 = vunpack.c.h.bf16 %v627_v45  ;;  %v153_v45 = vperm.slane %v2230_v3, 6  ;;  %v154_v46 = vperm.slane %v2230_v3, 7  ;;  %1336 = vmatpush.bf16.msra.mxu3 %v2004_v40 }
  0xc5   :  { %v608_v50 = vpack.c.bf16 %v602_v43, %v601_v42  ;;  %1356 = vmatpush.bf16.msrb.mxu1 %v2026_v34  ;;  %v2014_v34 = vld [vmem:[#allocation7 + $0x118] sm:$0xff] }
  0xc6   :  { %v639_v57 = vmul.f32 0.044677734, %v631_v51  ;;  %v640_v58 = vmul.f32 0.044677734, %v632_v52  ;;  %1343 = vmatpush.bf16.msrb.mxu0 %v2018_v33  ;;  %v2017_v51 = vld [vmem:[#allocation7 + $0x130] sm:$0xff] }
  0xc7   :  { %v613_v55 = vunpack.c.l.bf16 %v608_v50  ;;  %v614_v56 = vunpack.c.h.bf16 %v608_v50  ;;  %v2025_v52 = vld [vmem:[#allocation7 + $0x170] sm:$0xff] }
  0xc8   :  { %v647_v63 = vpack.c.bf16 %v640_v58, %v639_v57  ;;  %v2003_v57 = vld [vmem:[#allocation7 + $0xc0] sm:$0xff] }
  0xc9   :  { %v621_v61 = vmul.f32 %v613_v55, %v2244_v36  ;;  %v622_v62 = vmul.f32 %v614_v56, %v2246_v37  ;;  %v1995_v56 = vld [vmem:[#allocation7 + $0x80] sm:$0xff]  ;;  %1357 = vmatpush.bf16.msrb.mxu1 %v2025_v52  ;;  %1337 = vmatpush.bf16.msra.mxu3 %v2003_v57 }
  0xca   :  { %v651_v4 = vunpack.c.l.bf16 %v647_v63  ;;  %v652_v5 = vunpack.c.h.bf16 %v647_v63  ;;  %1344 = vmatpush.bf16.msrb.mxu0 %v2017_v51  ;;  %v2034_v63 = vld [vmem:[#allocation7 + $0x1b8] sm:$0xff]  ;;  %1324 = vmatpush.bf16.msra.mxu2 %v1995_v56 }
  0xcb   :  { %v628_v2 = vpack.c.bf16 %v622_v62, %v621_v61 }
  0xcc   :  { %v659_v10 = vadd.f32 %v651_v4, %v2236_v48  ;;  %v660_v11 = vadd.f32 %v652_v5, %v2238_v15 }
  0xcd   :  { %v633_v8 = vunpack.c.l.bf16 %v628_v2  ;;  %v634_v9 = vunpack.c.h.bf16 %v628_v2  ;;  %1382 = vmatpush.bf16.msrb.mxu3 %v2042_v0 }
  0xce   :  { %v667_v19 = vpack.c.bf16 %v660_v11, %v659_v10  ;;  %1369 = vmatpush.bf16.msrb.mxu2 %v2034_v63 }
  0xcf   :  { %v641_v16 = vmul.f32 0.044677734, %v633_v8  ;;  %v642_v17 = vmul.f32 0.044677734, %v634_v9  ;;  %v2016_v8 = vld [vmem:[#allocation7 + $0x128] sm:$0xff] }
  0xd0   :  { %v671_v24 = vunpack.c.l.bf16 %v667_v19  ;;  %v672_v25 = vunpack.c.h.bf16 %v667_v19  ;;  %v2024_v9 = vld [vmem:[#allocation7 + $0x168] sm:$0xff]  ;;  %1345 = vmatpush.bf16.msrb.mxu0 %v2016_v8 }
  0xd1   :  { %v648_v22 = vpack.c.bf16 %v642_v17, %v641_v16  ;;  %1358 = vmatpush.bf16.msrb.mxu1 %v2024_v9  ;;  %v2041_v16 = vld [vmem:[#allocation7 + $0x1f0] sm:$0xff] }
  0xd2   :  { %v679_v35 = vmul.f32 0.796875, %v671_v24  ;;  %v680_v38 = vmul.f32 0.796875, %v672_v25  ;;  %1370 = vmatpush.bf16.msrb.mxu2 %v2033_v14  ;;  %1383 = vmatpush.bf16.msrb.mxu3 %v2041_v16  ;;  %v2023_v24 = vld [vmem:[#allocation7 + $0x160] sm:$0xff]  ;;  %v2032_v25 = vld [vmem:[#allocation7 + $0x1a8] sm:$0xff]  ;;  %v2029_v16 = vld [vmem:[#allocation7 + $0x190] sm:$0xff] }
  0xd3   :  { %v544_v23 = vpop.f32.mrf.mxu0  ;;  %v557_v27 = vpop.f32.mrf.mxu1  ;;  %v653_v30 = vunpack.c.l.bf16 %v648_v22  ;;  %v654_v31 = vunpack.c.h.bf16 %v648_v22 }
  0xd4   :  { %v545_v26 = vadd.f32 %v544_v23, %v151_v12  ;;  %v558_v32 = vadd.f32 %v557_v27, %v152_v18  ;;  %v687_v44 = vpack.c.bf16 %v680_v38, %v679_v35  ;;  %v2015_v23 = vld [vmem:[#allocation7 + $0x120] sm:$0xff]  ;;  %v2022_v35 = vld [vmem:[#allocation7 + $0x158] sm:$0xff] }
  0xd5   :  { %v661_v41 = vadd.f32 %v653_v30, %v2244_v36  ;;  %v662_v42 = vadd.f32 %v654_v31, %v2246_v37  ;;  %v2040_v30 = vld [vmem:[#allocation7 + $0x1e8] sm:$0xff]  ;;  %1346 = vmatpush.bf16.msrb.mxu0 %v2015_v23  ;;  %1359 = vmatpush.bf16.msrb.mxu1 %v2023_v24 }
  0xd6   :  { %v589_v43 = vpack.c.bf16 %v558_v32, %v545_v26  ;;  %v691_v53 = vunpack.c.l.bf16 %v687_v44  ;;  %v692_v54 = vunpack.c.h.bf16 %v687_v44  ;;  %1371 = vmatpush.bf16.msrb.mxu2 %v2032_v25  ;;  %1384 = vmatpush.bf16.msrb.mxu3 %v2040_v30 }
  0xd7   :  { %v668_v47 = vpack.c.bf16 %v662_v42, %v661_v41  ;;  %v2031_v42 = vld [vmem:[#allocation7 + $0x1a0] sm:$0xff] }
  0xd8   :  { %v2264_v49 = vunpack.c.l.bf16 %v589_v43  ;;  %v2266_v50 = vunpack.c.h.bf16 %v589_v43  ;;  %2052 = vtanh.f32 %v691_v53  ;;  %v2039_v43 = vld [vmem:[#allocation7 + $0x1e0] sm:$0xff]  ;;  %v2013_v53 = vld [vmem:[#allocation7 + $0x110] sm:$0xff] }
  0xd9   :  { %v673_v58 = vunpack.c.l.bf16 %v668_v47  ;;  %v674_v59 = vunpack.c.h.bf16 %v668_v47  ;;  %2054 = vtanh.f32 %v692_v54  ;;  %1347 = vmatpush.bf16.msrb.mxu0 %v2014_v34  ;;  %1360 = vmatpush.bf16.msrb.mxu1 %v2022_v35  ;;  %v2021_v54 = vld [vmem:[#allocation7 + $0x150] sm:$0xff]  ;;  %v2028_v34 = vld [vmem:[#allocation7 + $0x188] sm:$0xff] }
  0xda   :  { %v570_v55 = vpop.f32.mrf.mxu2  ;;  %v603_v60 = vmul.f32 %v2264_v49, %v2264_v49  ;;  %v604_v3 = vmul.f32 %v2266_v50, %v2266_v50  ;;  %1372 = vmatpush.bf16.msrb.mxu2 %v2031_v42  ;;  %1385 = vmatpush.bf16.msrb.mxu3 %v2039_v43  ;;  %v2036_v35 = vld [vmem:[#allocation7 + $0x1c8] sm:$0xff] }
  0xdb   :  { %v583_v61 = vpop.f32.mrf.mxu3  ;;  %v546_v62 = vpop.f32.mrf.mxu0  ;;  %v571_v1 = vadd.f32 %v570_v55, %v153_v45  ;;  %v681_v5 = vmul.f32 0.796875, %v673_v58  ;;  %v682_v6 = vmul.f32 0.796875, %v674_v59 }
  0xdc   :  { %v584_v2 = vadd.f32 %v583_v61, %v154_v46  ;;  %v559_v4 = vpop.f32.mrf.mxu1  ;;  %v609_v7 = vpack.c.bf16 %v604_v3, %v603_v60  ;;  %v2030_v3 = vld [vmem:[#allocation7 + $0x198] sm:$0xff] }
  0xdd   :  { %v688_v11 = vpack.c.bf16 %v682_v6, %v681_v5  ;;  %v2038_v61 = vld [vmem:[#allocation7 + $0x1d8] sm:$0xff]  ;;  %1348 = vmatpush.bf16.msrb.mxu0 %v2013_v53  ;;  %1361 = vmatpush.bf16.msrb.mxu1 %v2021_v54  ;;  %v2012_v5 = vld [vmem:[#allocation7 + $0x108] sm:$0xff] }
  0xde   :  { %v590_v10 = vpack.c.bf16 %v584_v2, %v571_v1  ;;  %v615_v12 = vunpack.c.l.bf16 %v609_v7  ;;  %v616_v13 = vunpack.c.h.bf16 %v609_v7  ;;  %v2053_v26 = vpop.eup %2052  ;;  %v2020_v6 = vld [vmem:[#allocation7 + $0x148] sm:$0xff]  ;;  %1373 = vmatpush.bf16.msrb.mxu2 %v2030_v3  ;;  %1386 = vmatpush.bf16.msrb.mxu3 %v2038_v61 }
  0xdf   :  { %v693_v19 = vunpack.c.l.bf16 %v688_v11  ;;  %v694_v20 = vunpack.c.h.bf16 %v688_v11  ;;  %v2055_v31 = vpop.eup %2054 }
  0xe0   :  { %v2272_v17 = vunpack.c.l.bf16 %v590_v10  ;;  %v2274_v18 = vunpack.c.h.bf16 %v590_v10  ;;  %v623_v21 = vmul.f32 %v615_v12, %v2264_v49  ;;  %v624_v22 = vmul.f32 %v616_v13, %v2266_v50 }
  0xe1   :  { %2056 = vtanh.f32 %v693_v19  ;;  %v707_v39 = vpack.c.bf16 %v2055_v31, %v2053_v26  ;;  %v2037_v19 = vld [vmem:[#allocation7 + $0x1d0] sm:$0xff]  ;;  %1349 = vmatpush.bf16.msrb.mxu0 %v2012_v5  ;;  %1362 = vmatpush.bf16.msrb.mxu1 %v2020_v6 }
  0xe2   :  { %v605_v27 = vmul.f32 %v2272_v17, %v2272_v17  ;;  %v606_v28 = vmul.f32 %v2274_v18, %v2274_v18  ;;  %v572_v29 = vpop.f32.mrf.mxu2  ;;  %v629_v32 = vpack.c.bf16 %v624_v22, %v623_v21  ;;  %2058 = vtanh.f32 %v694_v20  ;;  %1374 = vmatpush.bf16.msrb.mxu2 %v2029_v16  ;;  %1387 = vmatpush.bf16.msrb.mxu3 %v2037_v19 }
  0xe3   :  { %v585_v33 = vpop.f32.mrf.mxu3  ;;  %v711_v46 = vunpack.c.l.bf16 %v707_v39  ;;  %v712_v47 = vunpack.c.h.bf16 %v707_v39 }
  0xe4   :  { %v610_v38 = vpack.c.bf16 %v606_v28, %v605_v27  ;;  %v635_v40 = vunpack.c.l.bf16 %v629_v32  ;;  %v636_v41 = vunpack.c.h.bf16 %v629_v32  ;;  %v2011_v27 = vld [vmem:[#allocation7 + $0x100] sm:$0xff] }
  0xe5   :  { %v719_v57 = vadd.f32 1.0, %v711_v46  ;;  %v720_v58 = vadd.f32 1.0, %v712_v47  ;;  %v2019_v28 = vld [vmem:[#allocation7 + $0x140] sm:$0xff]  ;;  %1350 = vmatpush.bf16.msrb.mxu0 %v2011_v27 }
  0xe6   :  { %v617_v44 = vunpack.c.l.bf16 %v610_v38  ;;  %v618_v45 = vunpack.c.h.bf16 %v610_v38  ;;  %v643_v51 = vmul.f32 0.044677734, %v635_v40  ;;  %v644_v52 = vmul.f32 0.044677734, %v636_v41  ;;  %1363 = vmatpush.bf16.msrb.mxu1 %v2019_v28  ;;  %1375 = vmatpush.bf16.msrb.mxu2 %v2028_v34 }
  0xe7   :  { %v2057_v59 = vpop.eup %2056  ;;  %v727_v0 = vpack.c.bf16 %v720_v58, %v719_v57  ;;  %1388 = vmatpush.bf16.msrb.mxu3 %v2036_v35  ;;  %v2035_v57 = vld [vmem:[#allocation7 + $0x1c0] sm:$0xff] }
  0xe8   :  { %v625_v55 = vmul.f32 %v617_v44, %v2272_v17  ;;  %v626_v56 = vmul.f32 %v618_v45, %v2274_v18  ;;  %v649_v60 = vpack.c.bf16 %v644_v52, %v643_v51  ;;  %v2059_v62 = vpop.eup %2058 }
  0xe9   :  { %v708_v4 = vpack.c.bf16 %v2059_v62, %v2057_v59  ;;  %v731_v9 = vunpack.c.l.bf16 %v727_v0  ;;  %v732_v10 = vunpack.c.h.bf16 %v727_v0 }
  0xea   :  { %v630_v63 = vpack.c.bf16 %v626_v56, %v625_v55  ;;  %v655_v1 = vunpack.c.l.bf16 %v649_v60  ;;  %v656_v2 = vunpack.c.h.bf16 %v649_v60  ;;  %v2027_v56 = vld [vmem:[#allocation7 + $0x180] sm:$0xff] }
  0xeb   :  { %v713_v13 = vunpack.c.l.bf16 %v708_v4  ;;  %v714_v14 = vunpack.c.h.bf16 %v708_v4  ;;  %v739_v22 = vmul.f32 0.5, %v731_v9  ;;  %v740_v23 = vmul.f32 0.5, %v732_v10  ;;  %1376 = vmatpush.bf16.msrb.mxu2 %v2027_v56  ;;  %1389 = vmatpush.bf16.msrb.mxu3 %v2035_v57 }
  0xec   :  { %v637_v7 = vunpack.c.l.bf16 %v630_v63  ;;  %v638_v8 = vunpack.c.h.bf16 %v630_v63  ;;  %v663_v11 = vadd.f32 %v655_v1, %v2264_v49  ;;  %v664_v12 = vadd.f32 %v656_v2, %v2266_v50 }
  0xed   :  { %v721_v25 = vadd.f32 1.0, %v713_v13  ;;  %v722_v26 = vadd.f32 1.0, %v714_v14  ;;  %v747_v30 = vpack.c.bf16 %v740_v23, %v739_v22 }
  0xee   :  { %v645_v20 = vmul.f32 0.044677734, %v637_v7  ;;  %v646_v21 = vmul.f32 0.044677734, %v638_v8  ;;  %v669_v24 = vpack.c.bf16 %v664_v12, %v663_v11 }
  0xef   :  { %v728_v33 = vpack.c.bf16 %v722_v26, %v721_v25  ;;  %v751_v40 = vunpack.c.l.bf16 %v747_v30  ;;  %v752_v41 = vunpack.c.h.bf16 %v747_v30 }
  0xf0   :  { %v650_v29 = vpack.c.bf16 %v646_v21, %v645_v20  ;;  %v675_v31 = vunpack.c.l.bf16 %v669_v24  ;;  %v676_v32 = vunpack.c.h.bf16 %v669_v24 }
  0xf1   :  { %v733_v44 = vunpack.c.l.bf16 %v728_v33  ;;  %v734_v45 = vunpack.c.h.bf16 %v728_v33  ;;  %v759_v51 = vmul.f32 %v751_v40, %v2236_v48  ;;  %v760_v52 = vmul.f32 %v752_v41, %v2238_v15 }
  0xf2   :  { %v657_v38 = vunpack.c.l.bf16 %v650_v29  ;;  %v658_v39 = vunpack.c.h.bf16 %v650_v29  ;;  %v683_v42 = vmul.f32 0.796875, %v675_v31  ;;  %v684_v43 = vmul.f32 0.796875, %v676_v32 }
  0xf3   :  { %v741_v54 = vmul.f32 0.5, %v733_v44  ;;  %v742_v55 = vmul.f32 0.5, %v734_v45  ;;  %v767_v59 = vpack.c.bf16 %v759_v51, %v759_v51  ;;  %v768_v60 = vpack.c.bf16 %v760_v52, %v760_v52 }
  0xf4   :  { %v665_v46 = vadd.f32 %v657_v38, %v2272_v17  ;;  %v666_v47 = vadd.f32 %v658_v39, %v2274_v18  ;;  %v689_v53 = vpack.c.bf16 %v684_v43, %v683_v42 }
  0xf5   :  { %v748_v62 = vpack.c.bf16 %v742_v55, %v741_v54  ;;  %1299 = vmatmul.bf16.vlgmr.msra.gmra.mxu0 %v767_v59  ;;  %1312 = vmatmul.bf16.vlgmr.msra.gmra.mxu1 %v768_v60  ;;  %v2051_v59 = vld [vmem:[%s2306_s4] ss:$0 sm:$0xff] }
  0xf6   :  { %v670_v58 = vpack.c.bf16 %v666_v47, %v665_v46  ;;  %v695_v3 = vunpack.c.l.bf16 %v689_v53  ;;  %v696_v61 = vunpack.c.h.bf16 %v689_v53 }
  0xf7   :  { %v753_v48 = vunpack.c.l.bf16 %v748_v62  ;;  %v754_v15 = vunpack.c.h.bf16 %v748_v62 }
  0xf8   :  { %v677_v63 = vunpack.c.l.bf16 %v670_v58  ;;  %v678_v0 = vunpack.c.h.bf16 %v670_v58  ;;  %2060 = vtanh.f32 %v695_v3 }
  0xf9   :  { %2062 = vtanh.f32 %v696_v61  ;;  %v761_v4 = vmul.f32 %v753_v48, %v2244_v36  ;;  %v762_v5 = vmul.f32 %v754_v15, %v2246_v37 }
  0xfa   :  { %v685_v1 = vmul.f32 0.796875, %v677_v63  ;;  %v686_v2 = vmul.f32 0.796875, %v678_v0 }
  0xfb   :  { %v769_v7 = vpack.c.bf16 %v761_v4, %v761_v4  ;;  %v770_v8 = vpack.c.bf16 %v762_v5, %v762_v5 }
  0xfc   :  { %v690_v6 = vpack.c.bf16 %v686_v2, %v685_v1 }
  0xfd   :  { %1325 = vmatmul.bf16.vlgmr.msra.gmra.mxu2 %v769_v7  ;;  %1338 = vmatmul.bf16.vlgmr.msra.gmra.mxu3 %v770_v8 }
  0xfe   :  { %v697_v9 = vunpack.c.l.bf16 %v690_v6  ;;  %v698_v10 = vunpack.c.h.bf16 %v690_v6  ;;  %v2061_v11 = vpop.eup %2060 }
  0xff   :  { %v2063_v12 = vpop.eup %2062 }
 0x100   :  { %2064 = vtanh.f32 %v697_v9  ;;  %v709_v13 = vpack.c.bf16 %v2063_v12, %v2061_v11 }
 0x101   :  { %2066 = vtanh.f32 %v698_v10 }
 0x102   :  { %v715_v14 = vunpack.c.l.bf16 %v709_v13  ;;  %v716_v16 = vunpack.c.h.bf16 %v709_v13 }
 0x104   :  { %v723_v19 = vadd.f32 1.0, %v715_v14  ;;  %v724_v20 = vadd.f32 1.0, %v716_v16 }
 0x106   :  { %v2065_v21 = vpop.eup %2064  ;;  %v729_v22 = vpack.c.bf16 %v724_v20, %v723_v19 }
 0x107   :  { %v2067_v36 = vpop.eup %2066 }
 0x108   :  { %v710_v37 = vpack.c.bf16 %v2067_v36, %v2065_v21  ;;  %v735_v23 = vunpack.c.l.bf16 %v729_v22  ;;  %v736_v24 = vunpack.c.h.bf16 %v729_v22 }
 0x10a   :  { %v717_v25 = vunpack.c.l.bf16 %v710_v37  ;;  %v718_v26 = vunpack.c.h.bf16 %v710_v37  ;;  %v743_v27 = vmul.f32 0.5, %v735_v23  ;;  %v744_v28 = vmul.f32 0.5, %v736_v24 }
 0x10c   :  { %v725_v29 = vadd.f32 1.0, %v717_v25  ;;  %v726_v30 = vadd.f32 1.0, %v718_v26  ;;  %v749_v31 = vpack.c.bf16 %v744_v28, %v743_v27 }
 0x10e   :  { %v730_v32 = vpack.c.bf16 %v726_v30, %v725_v29  ;;  %v755_v33 = vunpack.c.l.bf16 %v749_v31  ;;  %v756_v34 = vunpack.c.h.bf16 %v749_v31 }
 0x110   :  { %v737_v35 = vunpack.c.l.bf16 %v730_v32  ;;  %v738_v38 = vunpack.c.h.bf16 %v730_v32  ;;  %v763_v39 = vmul.f32 %v755_v33, %v2264_v49  ;;  %v764_v40 = vmul.f32 %v756_v34, %v2266_v50 }
 0x112   :  { %v745_v41 = vmul.f32 0.5, %v737_v35  ;;  %v746_v42 = vmul.f32 0.5, %v738_v38  ;;  %v771_v43 = vpack.c.bf16 %v763_v39, %v763_v39  ;;  %v772_v44 = vpack.c.bf16 %v764_v40, %v764_v40 }
 0x114   :  { %v750_v45 = vpack.c.bf16 %v746_v42, %v745_v41  ;;  %1351 = vmatmul.bf16.vlgmr.msrb.gmra.mxu0 %v771_v43  ;;  %1364 = vmatmul.bf16.vlgmr.msrb.gmra.mxu1 %v772_v44 }
 0x116   :  { %v757_v46 = vunpack.c.l.bf16 %v750_v45  ;;  %v758_v47 = vunpack.c.h.bf16 %v750_v45 }
 0x118   :  { %v765_v51 = vmul.f32 %v757_v46, %v2272_v17  ;;  %v766_v52 = vmul.f32 %v758_v47, %v2274_v18 }
 0x11a   :  { %v773_v53 = vpack.c.bf16 %v765_v51, %v765_v51  ;;  %v774_v54 = vpack.c.bf16 %v766_v52, %v766_v52 }
 0x11c   :  { %1377 = vmatmul.bf16.vlgmr.msrb.gmra.mxu2 %v773_v53  ;;  %1390 = vmatmul.bf16.vlgmr.msrb.gmra.mxu3 %v774_v54 }
 0x172   :  { %v1300_v49 = vpop.f32.mrf.mxu0  ;;  %v1313_v55 = vpop.f32.mrf.mxu1 }
 0x173   :  { %v1301_v61 = vadd.f32 %v2051_v59, %v1300_v49 }
 0x175   :  { %v1314_v17 = vadd.f32 %v1313_v55, %v1301_v61 }
 0x17a   :  { %v1302_v50 = vpop.f32.mrf.mxu0  ;;  %v1315_v56 = vpop.f32.mrf.mxu1 }
 0x180   :  { %v1326_v57 = vpop.f32.mrf.mxu2  ;;  %v1339_v58 = vpop.f32.mrf.mxu3 }
 0x181   :  { %v1327_v63 = vadd.f32 %v1326_v57, %v1314_v17 }
 0x183   :  { %v1340_v0 = vadd.f32 %v1339_v58, %v1327_v63 }
 0x188   :  { %v1328_v60 = vpop.f32.mrf.mxu2  ;;  %v1341_v3 = vpop.f32.mrf.mxu3 }
 0x191   :  { %v1352_v62 = vpop.f32.mrf.mxu0  ;;  %v1365_v18 = vpop.f32.mrf.mxu1 }
 0x192   :  { %v1353_v48 = vadd.f32 %v1352_v62, %v1340_v0 }
 0x194   :  { %v1366_v2 = vadd.f32 %v1365_v18, %v1353_v48 }
 0x199   :  { %v1354_v15 = vpop.f32.mrf.mxu0  ;;  %v1367_v1 = vpop.f32.mrf.mxu1 }
 0x19f   :  { %v1378_v4 = vpop.f32.mrf.mxu2  ;;  %v1391_v5 = vpop.f32.mrf.mxu3 }
 0x1a0   :  { %v1379_v6 = vadd.f32 %v1378_v4, %v1366_v2 }
 0x1a2   :  { %v1392_v7 = vadd.f32 %v1391_v5, %v1379_v6 }
 0x1a4   :  { %1395 = vst [vmem:[%s2307_s5] sm:$0xff] %v1392_v7 }
 0x1a7   :  { %v1380_v8 = vpop.f32.mrf.mxu2  ;;  %v1393_v9 = vpop.f32.mrf.mxu3 }
 0x1a8   :  { %1400 = vsyncpa [#allocation3], 1 }
 0x1a9   :  { %1401 = vsyncpa [#allocation5], 1 }
 0x1aa   :  { %1402 = vsyncpa [#allocation8], 1 }

</bundles_post_ra>
